<compile_context>
chip_gen: v7x
topology: tpu7x:2x2x1
jax: 0.10.0
libtpu: 0.0.40
codegen_flags: <defaults>
</compile_context>

<pallas_src>
import jax
import jax.numpy as jnp
from jax.experimental import pallas as pl
from jax.experimental.pallas import tpu as pltpu


def _sum_diff_kernel(left_ref, right_ref, sum_ref, diff_ref):
    # All refs are dense 2D VMEM tiles (rows x lanes).
    left = left_ref[...]
    right = right_ref[...]
    sum_ref[...] = left + right
    diff_ref[...] = left - right


_LANE = 128
_TARGET_TILE_BYTES = 4 * 1024 * 1024    # per array, per grid step (pre double-buffer)
_VMEM_LIMIT_BYTES = 48 * 1024 * 1024    # 8 buffers x 4 MiB = 32 MiB + headroom (< v7x 64 MiB)


def _round_up(x, m):
    return (x + m - 1) // m * m


def _round_down(x, m):
    return max(m, x // m * m)


def sum_and_difference(x):
    """Pallas implementation of SumAndDifference.forward.

    Args:
        x: (B, 2, N) array.
    Returns:
        (sum_sig, diff_sig): each (B, 1, N).
    """
    if x.shape[1] != 2:
        raise ValueError(f"Input must be stereo: {x.shape[1]} channel(s).")
    B, _, N = x.shape
    itemsize = jnp.dtype(x.dtype).itemsize
    # Sublanes per native vreg tile: 8 (f32) / 16 (bf16) / 32 (int8, fp8).
    sublanes = 8 * max(1, 4 // itemsize)

    cost = pl.CostEstimate(
        flops=2 * B * N,
        transcendentals=0,
        bytes_accessed=4 * B * N * itemsize,
    )
    cparams = pltpu.CompilerParams(
        dimension_semantics=("parallel", "parallel"),
        vmem_limit_bytes=_VMEM_LIMIT_BYTES,
    )

    if B < sublanes and N % _LANE == 0 and N >= _LANE:
        # ------------------------------------------------------------------
        # Sublane-dense "fold" path for small batch (typical stereo audio).
        # Free reshape: (B, 2, N) -> (B, 2, R, 128); a (tr, 128) block of one
        # channel is one contiguous HBM chunk and fills every sublane.
        # ------------------------------------------------------------------
        R = N // _LANE
        x4 = x.reshape(B, 2, R, _LANE)
        tr_target = _round_down(_TARGET_TILE_BYTES // (_LANE * itemsize), sublanes)
        tr = R if R <= tr_target else tr_target
        # Guarantee >=2 grid steps so both v7x TensorCores get work.
        if B == 1 and tr == R and R >= 2 * sublanes:
            tr = _round_up(pl.cdiv(R, 2), sublanes)
        grid = (B, pl.cdiv(R, tr))

        left_spec = pl.BlockSpec((pl.Squeezed(), pl.Squeezed(), tr, _LANE),
                                 lambda b, r: (b, 0, r, 0))
        right_spec = pl.BlockSpec((pl.Squeezed(), pl.Squeezed(), tr, _LANE),
                                  lambda b, r: (b, 1, r, 0))
        out_spec = pl.BlockSpec((pl.Squeezed(), tr, _LANE),
                                lambda b, r: (b, r, 0))
        out_shapes = (jax.ShapeDtypeStruct((B, R, _LANE), x.dtype),
                      jax.ShapeDtypeStruct((B, R, _LANE), x.dtype))

        sum_o, diff_o = pl.pallas_call(
            _sum_diff_kernel,
            out_shape=out_shapes,
            grid_spec=pl.GridSpec(
                grid=grid,
                in_specs=[left_spec, right_spec],
                out_specs=[out_spec, out_spec],
            ),
            compiler_params=cparams,
            cost_estimate=cost,
        )(x4, x4)
        # Free reshape back to PyTorch's unsqueeze(1) layout.
        return sum_o.reshape(B, 1, N), diff_o.reshape(B, 1, N)

    # ----------------------------------------------------------------------
    # General 2D path: rows = batch, lanes = samples.
    # TODO(synk): when B < sublanes and N is not a multiple of 128, tiles stay
    # sublane-sparse (no free fold available); acceptable fallback.
    # ----------------------------------------------------------------------
    tb = B if B < sublanes else sublanes
    row_pad = max(tb, sublanes)                       # VMEM pads rows to `sublanes`
    tn_target = _round_down(_TARGET_TILE_BYTES // (row_pad * itemsize), _LANE)
    tn = N if N <= tn_target else tn_target
    # If all of N fits in one block and batch is plentiful, grow rows instead.
    if tn == N and B >= 2 * sublanes:
        rows_target = _round_down(
            _TARGET_TILE_BYTES // (max(tn, _LANE) * itemsize), sublanes)
        tb = min(B // sublanes * sublanes, max(sublanes, rows_target))
    # Guarantee >=2 grid steps for v7x megacore when possible.
    if pl.cdiv(B, tb) * pl.cdiv(N, tn) == 1:
        if N >= 2 * _LANE:
            tn = _round_up(pl.cdiv(N, 2), _LANE)
        elif B >= 2 * sublanes:
            tb = _round_up(pl.cdiv(B, 2), sublanes)
    grid = (pl.cdiv(B, tb), pl.cdiv(N, tn))

    left_spec = pl.BlockSpec((tb, pl.Squeezed(), tn), lambda b, n: (b, 0, n))
    right_spec = pl.BlockSpec((tb, pl.Squeezed(), tn), lambda b, n: (b, 1, n))
    out_spec = pl.BlockSpec((tb, tn), lambda b, n: (b, n))
    out_shapes = (jax.ShapeDtypeStruct((B, N), x.dtype),
                  jax.ShapeDtypeStruct((B, N), x.dtype))

    sum2d, diff2d = pl.pallas_call(
        _sum_diff_kernel,
        out_shape=out_shapes,
        grid_spec=pl.GridSpec(
            grid=grid,
            in_specs=[left_spec, right_spec],
            out_specs=[out_spec, out_spec],
        ),
        compiler_params=cparams,
        cost_estimate=cost,
    )(x, x)
    return sum2d.reshape(B, 1, N), diff2d.reshape(B, 1, N)


def _check(x):
    sum_sig, diff_sig = sum_and_difference(x)
    jax.block_until_ready((sum_sig, diff_sig))
    B, _, N = x.shape
    ref_sum = (x[:, 0, :] + x[:, 1, :])[:, None, :]
    ref_diff = (x[:, 0, :] - x[:, 1, :])[:, None, :]
    assert sum_sig.shape == (B, 1, N) and diff_sig.shape == (B, 1, N)
    assert jnp.allclose(sum_sig.astype(jnp.float32), ref_sum.astype(jnp.float32)), "sum mismatch"
    assert jnp.allclose(diff_sig.astype(jnp.float32), ref_diff.astype(jnp.float32)), "diff mismatch"


if __name__ == "__main__":
    key = jax.random.PRNGKey(0)
    k1, k2, k3, k4, k5 = jax.random.split(key, 5)

    # Primary small case (typical stereo audio): fold path, tiny.
    _check(jax.random.normal(k1, (2, 2, 256), dtype=jnp.float32))

    # Fold path with several sublane rows per tile, grid split across batch.
    _check(jax.random.normal(k2, (2, 2, 8192), dtype=jnp.float32))

    # 2D path: B >= sublanes, exercises row growth + forced N split.
    _check(jax.random.normal(k3, (16, 2, 4096), dtype=jnp.float32))

    # 2D fallback: N not a multiple of 128 (ragged last lane block).
    _check(jax.random.normal(k4, (4, 2, 1000), dtype=jnp.float32))

    # bf16: exercises dtype-aware sublane count (16) on the fold path.
    _check(jax.random.normal(k5, (2, 2, 1024), dtype=jnp.bfloat16))

    print("KERNEL_OK")
</pallas_src>

<mosaic_0001>
module attributes {stable_mosaic.version = 11 : i64} {
  func.func @_sum_diff_kernel(%arg0: i32, %arg1: i32, %arg2: memref<1x1x2x128xf32, #tpu.memory_space<vmem>>, %arg3: memref<1x1x2x128xf32, #tpu.memory_space<vmem>>, %arg4: memref<1x2x128xf32, #tpu.memory_space<vmem>>, %arg5: memref<1x2x128xf32, #tpu.memory_space<vmem>>) attributes {dimension_semantics = [#tpu.dimension_semantics<parallel>, #tpu.dimension_semantics<parallel>], iteration_bounds = array<i64: 2, 1>, scalar_prefetch = 0 : i64, scratch_operands = 0 : i64, tpu.core_type = #tpu.core_type<tc>, window_params = [{transform_indices = @transform_0, window_bounds = array<i64: 1, 1, 2, 128>}, {transform_indices = @transform_1, window_bounds = array<i64: 1, 1, 2, 128>}, {transform_indices = @transform_2, window_bounds = array<i64: 1, 2, 128>}, {transform_indices = @transform_3, window_bounds = array<i64: 1, 2, 128>}]} {
    %c0 = arith.constant 0 : index
    %c0_0 = arith.constant 0 : index
    %c0_1 = arith.constant 0 : index
    %c0_2 = arith.constant 0 : index
    %0 = vector.load %arg2[%c0, %c0_0, %c0_1, %c0_2] : memref<1x1x2x128xf32, #tpu.memory_space<vmem>>, vector<1x1x2x128xf32>
    %1 = vector.shape_cast %0 : vector<1x1x2x128xf32> to vector<2x128xf32>
    %c0_3 = arith.constant 0 : index
    %c0_4 = arith.constant 0 : index
    %c0_5 = arith.constant 0 : index
    %c0_6 = arith.constant 0 : index
    %2 = vector.load %arg3[%c0_3, %c0_4, %c0_5, %c0_6] : memref<1x1x2x128xf32, #tpu.memory_space<vmem>>, vector<1x1x2x128xf32>
    %3 = vector.shape_cast %2 : vector<1x1x2x128xf32> to vector<2x128xf32>
    %4 = arith.addf %1, %3 : vector<2x128xf32>
    %c0_7 = arith.constant 0 : index
    %c0_8 = arith.constant 0 : index
    %c0_9 = arith.constant 0 : index
    %5 = vector.load %arg4[%c0_7, %c0_8, %c0_9] : memref<1x2x128xf32, #tpu.memory_space<vmem>>, vector<1x2x128xf32>
    %6 = vector.shape_cast %5 : vector<1x2x128xf32> to vector<2x128xf32>
    %7 = vector.shape_cast %4 : vector<2x128xf32> to vector<1x2x128xf32>
    tpu.vector_store %arg4[%c0_7, %c0_8, %c0_9], %7 {strides = array<i32>} : memref<1x2x128xf32, #tpu.memory_space<vmem>>, vector<1x2x128xf32>,
    %8 = arith.subf %1, %3 : vector<2x128xf32>
    %c0_10 = arith.constant 0 : index
    %c0_11 = arith.constant 0 : index
    %c0_12 = arith.constant 0 : index
    %9 = vector.load %arg5[%c0_10, %c0_11, %c0_12] : memref<1x2x128xf32, #tpu.memory_space<vmem>>, vector<1x2x128xf32>
    %10 = vector.shape_cast %9 : vector<1x2x128xf32> to vector<2x128xf32>
    %11 = vector.shape_cast %8 : vector<2x128xf32> to vector<1x2x128xf32>
    tpu.vector_store %arg5[%c0_10, %c0_11, %c0_12], %11 {strides = array<i32>} : memref<1x2x128xf32, #tpu.memory_space<vmem>>, vector<1x2x128xf32>,
    return
  }
  func.func @transform_0(%arg0: i32, %arg1: i32) -> (i32, i32, i32, i32) {
    %c0_i32 = arith.constant 0 : i32
    %c0_i32_0 = arith.constant 0 : i32
    %c0_i32_1 = arith.constant 0 : i32
    return %arg0, %c0_i32, %arg1, %c0_i32_0 : i32, i32, i32, i32
  }
  func.func @transform_1(%arg0: i32, %arg1: i32) -> (i32, i32, i32, i32) {
    %c1_i32 = arith.constant 1 : i32
    %c0_i32 = arith.constant 0 : i32
    %c0_i32_0 = arith.constant 0 : i32
    return %arg0, %c1_i32, %arg1, %c0_i32 : i32, i32, i32, i32
  }
  func.func @transform_2(%arg0: i32, %arg1: i32) -> (i32, i32, i32) {
    %c0_i32 = arith.constant 0 : i32
    %c0_i32_0 = arith.constant 0 : i32
    return %arg0, %arg1, %c0_i32 : i32, i32, i32
  }
  func.func @transform_3(%arg0: i32, %arg1: i32) -> (i32, i32, i32) {
    %c0_i32 = arith.constant 0 : i32
    %c0_i32_0 = arith.constant 0 : i32
    return %arg0, %arg1, %c0_i32 : i32, i32, i32
  }
}

</mosaic_0001>

<bundles_post_ra>
// kernel: tpu_custom_call.1
= control target key start
LH: loop header
LB: loop body
LE: loop exit
PB: predicated region body
PF: predicated region fallthrough
CT: control target
= control target key end

     0   :  { %9 = vsyncpa [#allocation3], 0  ;;  %s987_s0 = inlined_call_operand.hbm [shape: f32[2,2,2,128], index: 0, kind: input, shape index: {}]   ;;  %s988_s1 = inlined_call_operand.hbm [shape: f32[2,2,2,128], index: 1, kind: input, shape index: {}]   ;;  %s989_s2 = inlined_call_operand.hbm [shape: f32[2,2,128], index: 2, kind: output, shape index: {0}]   ;;  %s990_s3 = inlined_call_operand.hbm [shape: f32[2,2,128], index: 3, kind: output, shape index: {1}]  }
   0x1   :  { %11 = vsyncpa [#allocation3 + $0x1], 0 }
   0x2   :  { %12 = vsyncpa [#allocation6], 0 }
   0x3   :  { %14 = vsyncpa [#allocation6 + $0x1], 0 }
   0x4   :  { %15 = vsyncpa [#allocation4], 0 }
   0x5   :  { %17 = vsyncpa [#allocation4 + $0x1], 0 }
   0x6   :  { %18 = vsyncpa [#allocation9], 0 }
   0x7   :  { %20 = vsyncpa [#allocation9 + $0x1], 0  ;;  %s739_s12 = smov 0   ;;  %s741_s13 = smov 0  }
   0x8   :  { %s743_s14 = smov 0   ;;  %s745_s15 = smov 0  }
   0x9   :  { %s747_s16 = smov 0   ;;  %s749_s17 = smov 0  }
   0xa LB: > { %s439_s18 = sadd.s32 4294967295, %s713_s17   ;;  %s440_s19 = sadd.s32 4294967294, %s713_s17   ;;  %s713_s17 = sphi %s749_s17, %s26_s17   ;;  %s709_s16 = sphi %s747_s16, %s1010_s16   ;;  %s705_s15 = sphi %s745_s15, %s1009_s15   ;;  %s701_s14 = sphi %s743_s14, %s1008_s14   ;;  %s697_s13 = sphi %s741_s13, %s1007_s13   ;;  %s693_s12 = sphi %s739_s12, %s1006_s12  }
   0xb   : > { %s38_s20 = sadd.s32 1, %s709_s16  ;;  %s47_s21 = sadd.s32 1, %s701_s14 }
   0xc   : > { %p40_p0 = scmp.ge.s32.totalorder %s38_s20, 2  ;;  %p54_p1 = scmp.ne.s32.totalorder %s701_s14, %s697_s13 }
   0xd   : > { %p55_p2 = scmp.eq.s32.totalorder %s713_s17, 0  ;;  %p60_p3 = scmp.ne.s32.totalorder %s697_s13, %s693_s12 }
   0xe   : > { %s1012_s20 = smov (%p40_p0, %s38_s20), 0  ;;  %p61_p5 = scmp.eq.s32.totalorder %s439_s18, 0 }
   0xf   : > { %p780_p4 = por %p55_p2, %p54_p1  ;;  %s42_s23 = ssub.s32 %s709_s16, %s1012_s20 }
  0x10   : > { %p114_p6 = scmp.eq.s32.totalorder %s439_s18, 1  ;;  %p45_p7 = scmp.eq.s32.totalorder %s42_s23, 0 }
  0x11   : > { %p786_p8 = por %p61_p5, %p60_p3  ;;  %p120_p10 = scmp.eq.s32.totalorder %s440_s19, 1 }
  0x12   : > { %p790_p9 = por %p114_p6, %p54_p1  ;;  %p484_p13 = scmp.lt.s32.totalorder %s713_s17, 2 }
  0x13   : > { %s994_s24 = scalar_select %p786_p8, 1, 0 }
  0x14   : > { %s995_s25 = scalar_select %p790_p9, 1, 0 }
  0x15   : > { %s795_s26 = scalar_select %p45_p7, %s701_s14, %s47_s21  }
  0x16   : > { %p797_p11 = por %p120_p10, %p60_p3  ;;  %s804_s28 = sand.u32 1, %s701_s14  }
  0x17   : > { %s443_s29 = sshll.u32 %s804_s28, 1  ;;  %s460_s30 = sshll.u32 %s709_s16, 6 }
  0x18   : > { %s996_s27 = scalar_select %p797_p11, 1, 0 }
  0x19   : > { %s813_s6 = scalar_lea.hbm %s987_s0, %s460_s30  ;;  %s172_s7 = scalar_lea.vmem [#allocation2], %s443_s29 }
  0x1a   : > { %s181_s8 = sshll.u32 %s172_s7, 4  ;;  %p821_p0 = pnand %p484_p13, %p780_p4  ;;  %s817_s8 = int_to_ptr.vmem [resolvable:$true] %s181_s8 }
  0x1b   : > { %s169_s10 = scalar_lea.sflag [#allocation3], %s804_s28  ;;  %s534_s11 = scalar_lea.hbm %s813_s6, 32 }
  0x1c   : > { %p535_p3 = scmp.ne.s32.totalorder %s813_s6, %s534_s11  ;;  %p536_p5 = pneg %p821_p0 }
  0x1d   : > { %s539_s21 = scalar_lea.hbm %s987_s0, 128  ;;  %p540_p4 = scmp.lt.u32.totalorder %s813_s6, %s987_s0 }
  0x1e   : > { %p537_p6 = pnand %p536_p5, %p535_p3  ;;  %p541_p10 = scmp.lt.u32.totalorder %s539_s21, %s534_s11 }
  0x1f   : > { %p543_p12 = scmp.lt.u32.totalorder %s534_s11, %s813_s6 }
  0x20   : > { %p538_p7 = pneg %p537_p6  ;;  %p542_p13 = por %p541_p10, %p540_p4 }
  0x22   : > { %p544_p1 = por %p543_p12, %p542_p13 }
  0x24   : > { %p545_p2 = pnand %p544_p1, %p538_p7 }
  0x26   : > { %548 = shalt.err (!%p545_p2)
}
  0x27   : > { %s549_s4 = scalar_lea.vmem %s817_s8, 32  ;;  %s715_s5 = smov [#allocation2]  }
  0x28   : > { %p550_p3 = scmp.ne.s32.totalorder %s817_s8, %s549_s4  ;;  %s554_s7 = sshll.u32 %s715_s5, 4  ;;  %s555_s7 = int_to_ptr.vmem [resolvable:$false] %s554_s7 }
  0x29   : > { %s556_s18 = scalar_lea.vmem %s555_s7, 64  ;;  %p557_p9 = scmp.lt.s32.totalorder %s817_s8, %s555_s7 }
  0x2a   : > { %p552_p6 = pnand %p550_p3, %p536_p5  ;;  %p558_p4 = scmp.lt.s32.totalorder %s556_s18, %s549_s4 }
  0x2c   : > { %p553_p11 = pneg %p552_p6  ;;  %p559_p10 = por %p558_p4, %p557_p9 }
  0x2e   : > { %p560_p12 = pnand %p559_p10, %p553_p11 }
  0x30   : > { %563 = shalt.err (!%p560_p12)
}
  0x31   : > { %473 = dma.hbm_to_vmem [thread:$0]  (!%p821_p0), %s813_s6, 32, %s817_s8, %s169_s10  }
  0x32   : > { %p998_p1 = scmp.lt.s32.totalorder %s713_s17, 3  ;;  %p999_p2 = scmp.ge.s32.totalorder %s713_s17, 1 }
  0x33   : > { %s351_s22 = scalar_lea.hbm %s988_s1, %s460_s30  ;;  %s192_s23 = scalar_lea.vmem [#allocation5], %s443_s29 }
  0x34   : > { %p857_p7 = pnand %p999_p2, %p998_p1  ;;  %s202_s4 = sshll.u32 %s192_s23, 4  ;;  %s203_s4 = int_to_ptr.vmem [resolvable:$true] %s202_s4 }
  0x35   : > { %s868_s5 = scalar_lea.hbm %s351_s22, 32  ;;  %s189_s6 = scalar_lea.sflag [#allocation6], %s804_s28 }
  0x36   : > { %s1000_s11 = scalar_select %p857_p7, 1, 0 }
  0x37   : > { %s594_s8 = scalar_lea.hbm %s351_s22, 64  ;;  %s569_s30 = scalar_lea.hbm %s988_s1, 128 }
  0x38   : > { %p565_p9 = scmp.ne.s32.totalorder %s868_s5, %s594_s8  ;;  %p570_p3 = scmp.lt.u32.totalorder %s868_s5, %s988_s1 }
  0x39   : > { %p571_p6 = scmp.lt.u32.totalorder %s569_s30, %s594_s8  ;;  %p573_p10 = scmp.lt.u32.totalorder %s594_s8, %s868_s5 }
  0x3a   : > { %p567_p11 = pnand %p565_p9, %p536_p5 }
  0x3b   : > { %p572_p4 = por %p571_p6, %p570_p3 }
  0x3c   : > { %p568_p13 = pneg %p567_p11 }
  0x3d   : > { %p574_p12 = por %p573_p10, %p572_p4 }
  0x3f   : > { %p575_p1 = pnand %p574_p12, %p568_p13 }
  0x41   : > { %578 = shalt.err (!%p575_p1)
}
  0x42   : > { %s579_s28 = scalar_lea.vmem %s203_s4, 32  ;;  %s716_s19 = smov [#allocation5]  }
  0x43   : > { %p580_p2 = scmp.ne.s32.totalorder %s203_s4, %s579_s28  ;;  %s584_s21 = sshll.u32 %s716_s19, 4  ;;  %s585_s21 = int_to_ptr.vmem [resolvable:$false] %s584_s21 }
  0x44   : > { %s586_s22 = scalar_lea.vmem %s585_s21, 64  ;;  %p587_p8 = scmp.lt.s32.totalorder %s203_s4, %s585_s21 }
  0x45   : > { %p582_p9 = pnand %p580_p2, %p536_p5  ;;  %p588_p7 = scmp.lt.s32.totalorder %s586_s22, %s579_s28 }
  0x47   : > { %p583_p11 = pneg %p582_p9  ;;  %p589_p3 = por %p588_p7, %p587_p8 }
  0x49   : > { %p590_p6 = pnand %p589_p3, %p583_p11 }
  0x4b   : > { %593 = shalt.err (!%p590_p6)
}
  0x4c   : > { %476 = dma.hbm_to_vmem [thread:$0]  (!%p821_p0), %s868_s5, 32, %s203_s4, %s189_s6  }
  0x4d   : > { %p1001_p13 = scmp.ne.s32.totalorder %s1000_s11, 0 }
  0x4e   : > { %s892_s23 = sand.u32 (!%p1001_p13), 1, %s697_s13   ;;  %p1002_p5 = scmp.ne.s32.totalorder (!%p1001_p13), %s994_s24, 0 }
  0x4f   : > { %211 = sbr.rel (%p1001_p13) target bundleno = 139 (0x8b), region = 28  ;;  %s450_s8 = sshll.u32 (!%p1001_p13), %s892_s23, 1 }
  0x50   : > { %s214_s10 = scalar_lea.sflag (!%p1001_p13), [#allocation3], %s892_s23  ;;  %s217_s7 = scalar_lea.vmem (!%p1001_p13), [#allocation2], %s450_s8 }
  0x56   : > { %676 = dma.done.wait (%p1002_p5), %s214_s10, 32  }
  0x57   : > { %678 = vsyncadd (%p1002_p5), %s214_s10, 4294967264  ;;  %s223_s9 = scalar_lea.sflag [#allocation6], %s892_s23  ;;  %s226_s4 = scalar_lea.vmem [#allocation5], %s450_s8 }
  0x58   : > { %680 = dma.done.wait (%p1002_p5), %s223_s9, 32  }
  0x59   : > { %682 = vsyncadd (%p1002_p5), %s223_s9, 4294967264  ;;  %s251_s11 = scalar_lea.vmem [#allocation7], %s450_s8  ;;  %s258_s6 = scalar_lea.vmem [#allocation8], %s450_s8  ;;  %v259_v0 = vld [vmem:[%s217_s7] sm:$0x3] }
  0x5a   : > { %s285_s5 = sshll.u32 %s251_s11, 4  ;;  %s299_s30 = sshll.u32 %s258_s6, 4  ;;  %v260_v1 = vld [vmem:[%s226_s4] sm:$0x3]  ;;  %s906_s5 = int_to_ptr.vmem [resolvable:$true] %s285_s5  ;;  %s908_s30 = int_to_ptr.vmem [resolvable:$true] %s299_s30 }
  0x5b   : > { %s456_s18 = sshll.u32 %s705_s15, 5  ;;  %v261_v2 = vadd.f32 %v260_v1, %v259_v0  ;;  %v263_v3 = vsub.f32 %v259_v0, %v260_v1  ;;  %s266_s22 = scalar_lea.sflag [#allocation4], %s892_s23 }
  0x5c   : > { %s913_s28 = scalar_lea.hbm %s989_s2, %s456_s18  ;;  %s918_s15 = scalar_lea.hbm %s990_s3, %s456_s18 }
  0x5d   : > { %262 = vst [vmem:[%s251_s11] sm:$0x3] %v261_v2  ;;  %264 = vst [vmem:[%s258_s6] sm:$0x3] %v263_v3  ;;  %s595_s8 = scalar_lea.vmem %s906_s5, 32  ;;  %p1003_p0 = scmp.ne.s32.totalorder %s995_s25, 0 }
  0x5e   : > { %p596_p8 = scmp.ne.s32.totalorder %s906_s5, %s595_s8  ;;  %s717_s10 = smov [#allocation7]  }
  0x5f   : > { %s599_s7 = sshll.u32 %s717_s10, 4  ;;  %s600_s7 = int_to_ptr.vmem [resolvable:$false] %s599_s7 }
  0x60   : > { %p597_p7 = pnand %p596_p8, %p1003_p0  ;;  %s601_s9 = scalar_lea.vmem %s600_s7, 64 }
  0x61   : > { %p602_p10 = scmp.lt.s32.totalorder %s906_s5, %s600_s7  ;;  %p603_p12 = scmp.lt.s32.totalorder %s601_s9, %s595_s8 }
  0x62   : > { %p598_p4 = pneg %p597_p7 }
  0x63   : > { %p604_p1 = por %p603_p12, %p602_p10 }
  0x65   : > { %p605_p2 = pnand %p604_p1, %p598_p4 }
  0x67   : > { %608 = shalt.err (!%p605_p2)
}
  0x68   : > { %s609_s4 = scalar_lea.hbm %s913_s28, 32  ;;  %s613_s18 = scalar_lea.hbm %s989_s2, 64 }
  0x69   : > { %p610_p9 = scmp.ne.s32.totalorder %s913_s28, %s609_s4  ;;  %p614_p6 = scmp.lt.u32.totalorder %s913_s28, %s989_s2 }
  0x6a   : > { %p615_p13 = scmp.lt.u32.totalorder %s613_s18, %s609_s4  ;;  %p617_p8 = scmp.lt.u32.totalorder %s609_s4, %s913_s28 }
  0x6b   : > { %p611_p11 = pnand %p610_p9, %p1003_p0 }
  0x6c   : > { %p616_p5 = por %p615_p13, %p614_p6 }
  0x6d   : > { %p612_p3 = pneg %p611_p11 }
  0x6e   : > { %p618_p7 = por %p617_p8, %p616_p5 }
  0x70   : > { %p619_p4 = pnand %p618_p7, %p612_p3 }
  0x72   : > { %622 = shalt.err (!%p619_p4)
}
  0x73   : > { %466 = dma.vmem_to_hbm [thread:$0]  (%p1003_p0), %s906_s5, 32, %s913_s28, %s266_s22  }
  0x74   : > { %s271_s19 = scalar_lea.sflag [#allocation9], %s892_s23  ;;  %s623_s21 = scalar_lea.vmem %s908_s30, 32 }
  0x75   : > { %p624_p10 = scmp.ne.s32.totalorder %s908_s30, %s623_s21  ;;  %s718_s8 = smov [#allocation8]  }
  0x76   : > { %s627_s10 = sshll.u32 %s718_s8, 4  ;;  %s628_s10 = int_to_ptr.vmem [resolvable:$false] %s627_s10 }
  0x77   : > { %p625_p12 = pnand %p624_p10, %p1003_p0  ;;  %s629_s7 = scalar_lea.vmem %s628_s10, 64 }
  0x78   : > { %p630_p2 = scmp.lt.s32.totalorder %s908_s30, %s628_s10  ;;  %p631_p9 = scmp.lt.s32.totalorder %s629_s7, %s623_s21 }
  0x79   : > { %p626_p1 = pneg %p625_p12 }
  0x7a   : > { %p632_p11 = por %p631_p9, %p630_p2 }
  0x7c   : > { %p633_p3 = pnand %p632_p11, %p626_p1 }
  0x7e   : > { %636 = shalt.err (!%p633_p3)
}
  0x7f   : > { %s637_s23 = scalar_lea.hbm %s918_s15, 32  ;;  %s641_s22 = scalar_lea.hbm %s990_s3, 64 }
  0x80   : > { %p638_p6 = scmp.ne.s32.totalorder %s918_s15, %s637_s23  ;;  %p642_p8 = scmp.lt.u32.totalorder %s918_s15, %s990_s3 }
  0x81   : > { %p643_p7 = scmp.lt.u32.totalorder %s641_s22, %s637_s23  ;;  %p645_p10 = scmp.lt.u32.totalorder %s637_s23, %s918_s15 }
  0x82   : > { %p639_p13 = pnand %p638_p6, %p1003_p0 }
  0x83   : > { %p644_p4 = por %p643_p7, %p642_p8 }
  0x84   : > { %p640_p5 = pneg %p639_p13 }
  0x85   : > { %p646_p12 = por %p645_p10, %p644_p4 }
  0x87   : > { %p647_p1 = pnand %p646_p12, %p640_p5 }
  0x89   : > { %650 = shalt.err (!%p647_p1)
}
  0x8a   : > { %467 = dma.vmem_to_hbm [thread:$0]  (%p1003_p0), %s908_s30, 32, %s918_s15, %s271_s19  }
  0x8b PF: > { %s311_s11 = sand.u32 1, %s693_s12   ;;  %p1004_p2 = scmp.ne.s32.totalorder %s996_s27, 0 }
  0x8c   : > { %p1005_p9 = scmp.ge.s32.totalorder %s713_s17, 2  ;;  %s312_s6 = scalar_lea.sflag [#allocation4], %s311_s11 }
  0x8e   : > { %p478_p11 = pnand %p1005_p9, %p1004_p2 }
  0x90   : > { %684 = dma.done.wait (!%p478_p11), %s312_s6, 32  }
  0x91   : > { %686 = vsyncadd (!%p478_p11), %s312_s6, 4294967264  ;;  %s321_s18 = scalar_lea.sflag [#allocation9], %s311_s11 }
  0x92   : > { %688 = dma.done.wait (!%p478_p11), %s321_s18, 32  }
  0x93   : > { %690 = vsyncadd (!%p478_p11), %s321_s18, 4294967264  ;;  %s26_s17 = sadd.s32 1, %s713_s17   ;;  %s1006_s12 = smov %s697_s13 }
  0x94   : > { %p23_p3 = scmp.ge.s32.totalorder %s26_s17, 4   ;;  %s1007_s13 = smov %s701_s14 }
  0x95   : > { %s1008_s14 = smov %s795_s26  ;;  %s1009_s15 = smov %s709_s16 }
  0x96   : > { %s1010_s16 = smov %s1012_s20  ;;  %25 = sbr.rel (!%p23_p3) target bundleno = 10 (0xa), region = 103 }
  0x9d   :  { %326 = vsyncpa [#allocation3], 1 }
  0x9e   :  { %328 = vsyncpa [#allocation3 + $0x1], 1 }
  0x9f   :  { %329 = vsyncpa [#allocation6], 1 }
  0xa0   :  { %331 = vsyncpa [#allocation6 + $0x1], 1 }
  0xa1   :  { %332 = vsyncpa [#allocation4], 1 }
  0xa2   :  { %334 = vsyncpa [#allocation4 + $0x1], 1 }
  0xa3   :  { %335 = vsyncpa [#allocation9], 1 }
  0xa4   :  { %337 = vsyncpa [#allocation9 + $0x1], 1 }

</bundles_post_ra>
